<compile_context>
chip_gen: v7x
topology: tpu7x:2x2x1
jax: 0.10.0
libtpu: 0.0.40
codegen_flags: <defaults>
</compile_context>

<pallas_src>
import functools
import random

import jax
import jax.numpy as jnp
from jax.experimental import pallas as pl
from jax.experimental.pallas import tpu as pltpu

_MIB = 1024 * 1024


# ---------------------------------------------------------------------------
# VMEM sizing helpers
# ---------------------------------------------------------------------------

def _vmem_capacity_bytes():
    try:
        return int(pltpu.get_tpu_info().vmem_capacity_bytes)
    except Exception:
        return 64 * _MIB  # conservative (v7x-sized) fallback


def _clamp_vmem_limit(needed_bytes, capacity_bytes):
    headroom = 12 * _MIB          # compiler-internal scratch etc.
    lo = 32 * _MIB
    hi = max(lo, capacity_bytes - headroom)
    return int(min(max(int(needed_bytes), lo), hi))


def _sublane_packing(itemsize):
    # 8 rows for f32, 16 for bf16, 32 for int8.
    return 8 * max(1, 4 // itemsize)


# ---------------------------------------------------------------------------
# Main path: one fused kernel, whole (n, c) instances per block
# ---------------------------------------------------------------------------

def _adain_fused_kernel(perm_ref, c_ref, s_ref, o_ref, *, eps, hw):
    # perm_ref: scalar-prefetch permutation (consumed only by the index_maps).
    # c_ref / s_ref / o_ref: (1, cb, HW) tiles; each row is one (n, c) instance.
    del perm_ref
    c = c_ref[...].astype(jnp.float32)
    s = s_ref[...].astype(jnp.float32)

    inv_hw = 1.0 / hw
    inv_hw_m1 = 1.0 / max(hw - 1, 1)   # torch var default: unbiased (HW - 1)

    # Single-pass sum / sum-of-squares (f32 accumulation); no centered copies.
    c_sum = jnp.sum(c, axis=-1, keepdims=True)
    c_sq = jnp.sum(c * c, axis=-1, keepdims=True)
    c_mean = c_sum * inv_hw
    c_var = jnp.maximum((c_sq - c_sum * c_mean) * inv_hw_m1, 0.0)
    c_std = jnp.sqrt(c_var + eps) + eps   # extra +eps mirrors the torch reference

    s_sum = jnp.sum(s, axis=-1, keepdims=True)
    s_sq = jnp.sum(s * s, axis=-1, keepdims=True)
    s_mean = s_sum * inv_hw
    s_var = jnp.maximum((s_sq - s_sum * s_mean) * inv_hw_m1, 0.0)
    s_std = jnp.sqrt(s_var + eps)

    # One divide per (n, c) row; per-element work fused into a single affine.
    scale = s_std / c_std
    shift = s_mean - c_mean * scale
    o_ref[...] = (c * scale + shift).astype(o_ref.dtype)


def _choose_channel_block(C, HW, itemsize, budget_bytes):
    """How many (n, c) instances per block; returns None if split path needed."""
    packing = _sublane_packing(itemsize)
    # 3 arrays (content, style, out) x 2 pipeline buffers, plus ~4 block-sized
    # f32 temporaries inside the kernel (upcasts / products / result).
    per_row = 6 * HW * itemsize + 4 * HW * 4
    max_cb = budget_bytes // per_row
    if max_cb < min(C, packing):
        return None  # even the smallest legal block does not fit -> split path
    if C <= max_cb:
        return C, C  # full-C block: always a legal tile (block dim == array dim)
    divs = [d for d in range(packing, C, packing) if C % d == 0 and d <= max_cb]
    if divs:
        return max(divs), C
    # No suitable divisor of C: pad C up (rare pathological shapes).
    # TODO(synk): handle the ragged last channel block in-kernel instead of the
    # pad + slice to avoid the extra HBM round-trip on these shapes.
    cb = packing * max(1, max_cb // packing)
    c_pad = ((C + cb - 1) // cb) * cb
    return cb, c_pad


# ---------------------------------------------------------------------------
# Split path (very large H*W): stats reduction kernel + fused affine apply
# ---------------------------------------------------------------------------

def _stats_kernel(x_ref, sum_ref, sq_ref, *, hw, hwb, need_mask):
    @pl.when(pl.program_id(1) == 0)
    def _():
        sum_ref[...] = jnp.zeros_like(sum_ref)
        sq_ref[...] = jnp.zeros_like(sq_ref)

    xb = x_ref[...].astype(jnp.float32)
    if need_mask:
        col = jax.lax.broadcasted_iota(jnp.int32, xb.shape, 1) + pl.program_id(1) * hwb
        xb = jnp.where(col < hw, xb, 0.0)
    sum_ref[...] += jnp.sum(xb, axis=-1, keepdims=True)
    sq_ref[...] += jnp.sum(xb * xb, axis=-1, keepdims=True)


def _apply_kernel(x_ref, scale_ref, shift_ref, o_ref):
    xb = x_ref[...].astype(jnp.float32)
    o_ref[...] = (xb * scale_ref[...] + shift_ref[...]).astype(o_ref.dtype)


def _choose_split_tiles(rows, HW, itemsize, budget_bytes):
    packing = _sublane_packing(itemsize)
    rb = rows if rows <= packing else packing
    # ~4 buffers of input dtype + ~2 f32 temporaries per element of a row block.
    per_col = rb * (4 * itemsize + 2 * 4)
    hwb_cap = max(128, (budget_bytes // per_col) // 128 * 128)
    if HW <= hwb_cap:
        return rb, HW
    hwb = hwb_cap
    for d in range(hwb_cap, 127, -128):   # prefer a divisor of HW (skips masking)
        if HW % d == 0:
            hwb = d
            break
    return rb, hwb


def _padain_split(x, perm_indices, eps, budget_bytes, capacity):
    N, C, H, W = x.shape
    HW = H * W
    rows = N * C
    itemsize = jnp.dtype(x.dtype).itemsize
    rb, hwb = _choose_split_tiles(rows, HW, itemsize, budget_bytes)
    need_mask = (HW % hwb) != 0
    row_steps = pl.cdiv(rows, rb)
    hw_steps = pl.cdiv(HW, hwb)

    x2d = x.reshape(rows, HW)
    vmem_limit = _clamp_vmem_limit(8 * rb * hwb * max(itemsize, 4) + 2 * _MIB, capacity)

    # Pass 1: per-(n, c) sum and sum-of-squares (reduction axis last, arbitrary).
    stats_kernel = functools.partial(_stats_kernel, hw=HW, hwb=hwb, need_mask=need_mask)
    sums, sqs = pl.pallas_call(
        stats_kernel,
        out_shape=(jax.ShapeDtypeStruct((rows, 1), jnp.float32),
                   jax.ShapeDtypeStruct((rows, 1), jnp.float32)),
        grid=(row_steps, hw_steps),
        in_specs=[pl.BlockSpec((rb, hwb), lambda r, h: (r, h))],
        out_specs=(pl.BlockSpec((rb, 1), lambda r, h: (r, 0)),
                   pl.BlockSpec((rb, 1), lambda r, h: (r, 0))),
        compiler_params=pltpu.CompilerParams(
            dimension_semantics=("parallel", "arbitrary"),
            vmem_limit_bytes=vmem_limit,
        ),
    )(x2d)

    # Tiny host-side combine + permutation gather (x[perm] never materialized).
    inv_hw = 1.0 / HW
    inv_hw_m1 = 1.0 / max(HW - 1, 1)
    s_nc = sums.reshape(N, C)
    q_nc = sqs.reshape(N, C)
    mean = s_nc * inv_hw
    var = jnp.maximum((q_nc - s_nc * mean) * inv_hw_m1, 0.0)
    c_std = jnp.sqrt(var + eps) + eps
    sty_mean = mean[perm_indices]
    sty_std = jnp.sqrt(var[perm_indices] + eps)
    scale = sty_std / c_std
    shift = sty_mean - mean * scale
    scale2d = scale.reshape(rows, 1).astype(jnp.float32)
    shift2d = shift.reshape(rows, 1).astype(jnp.float32)

    # Pass 2: fused affine apply.
    out2d = pl.pallas_call(
        _apply_kernel,
        out_shape=jax.ShapeDtypeStruct((rows, HW), x.dtype),
        grid=(row_steps, hw_steps),
        in_specs=[pl.BlockSpec((rb, hwb), lambda r, h: (r, h)),
                  pl.BlockSpec((rb, 1), lambda r, h: (r, 0)),
                  pl.BlockSpec((rb, 1), lambda r, h: (r, 0))],
        out_specs=pl.BlockSpec((rb, hwb), lambda r, h: (r, h)),
        compiler_params=pltpu.CompilerParams(
            dimension_semantics=("parallel", "parallel"),
            vmem_limit_bytes=vmem_limit,
        ),
    )(x2d, scale2d, shift2d)

    return out2d.reshape(N, C, H, W)


# ---------------------------------------------------------------------------
# Public entry point
# ---------------------------------------------------------------------------

def padain_pallas(x, perm_indices, eps=1e-5, vmem_budget_bytes=None):
    """AdaIN(x, x[perm_indices]) without materializing the permuted style tensor."""
    N, C, H, W = x.shape
    HW = H * W
    itemsize = jnp.dtype(x.dtype).itemsize

    capacity = _vmem_capacity_bytes()
    if vmem_budget_bytes is None:
        # ~40% of physical VMEM for user buffers (~26 MiB v7x, ~51 MiB v5e/v6e);
        # the rest covers double-buffering slack + compiler internal scratch.
        vmem_budget_bytes = int(capacity * 0.40)

    choice = _choose_channel_block(C, HW, itemsize, vmem_budget_bytes)
    if choice is None:
        # Whole (n, c) rows do not fit in VMEM (very large H*W): two-kernel path.
        return _padain_split(x, perm_indices, eps, vmem_budget_bytes, capacity)
    cb, c_pad = choice

    # Guarantee >= 2 grid steps on the parallel axes when possible so a v7x
    # chip's second TensorCore has work (no-op on 1-TC v5e/v6e).
    packing = _sublane_packing(itemsize)
    while N * (c_pad // cb) < 2:
        half = cb // 2
        if half >= packing and half % packing == 0 and c_pad % half == 0:
            cb = half
        else:
            break

    x3d = x.reshape(N, C, HW)
    if c_pad != C:
        # Fallback only (rare shapes); the normal path never pads or slices.
        x3d = jnp.pad(x3d, ((0, 0), (0, c_pad - C), (0, 0)))

    block_bytes = cb * HW * itemsize
    # 3 arrays x 2 pipeline buffers + ~4 block-sized f32 temporaries + slack,
    # clamped to (physical VMEM - headroom) so it never exceeds capacity.
    needed = 6 * block_bytes + 4 * cb * HW * 4 + 2 * _MIB
    vmem_limit = _clamp_vmem_limit(needed, capacity)

    kernel = functools.partial(_adain_fused_kernel, eps=eps, hw=HW)

    out3d = pl.pallas_call(
        kernel,
        out_shape=jax.ShapeDtypeStruct((N, c_pad, HW), x.dtype),
        grid_spec=pltpu.PrefetchScalarGridSpec(
            num_scalar_prefetch=1,
            grid=(N, c_pad // cb),
            in_specs=[
                # content: x[n, c-block]
                pl.BlockSpec((1, cb, HW), lambda n, c, perm: (n, c, 0)),
                # style: x[perm[n], c-block]  (same HBM array, permuted batch idx)
                pl.BlockSpec((1, cb, HW), lambda n, c, perm: (perm[n], c, 0)),
            ],
            out_specs=pl.BlockSpec((1, cb, HW), lambda n, c, perm: (n, c, 0)),
        ),
        compiler_params=pltpu.CompilerParams(
            dimension_semantics=("parallel", "parallel"),
            vmem_limit_bytes=vmem_limit,
        ),
    )(perm_indices, x3d, x3d)

    if c_pad != C:
        out3d = out3d[:, :C, :]
    return out3d.reshape(N, C, H, W)


class PermuteAdaptiveInstanceNorm2d:
    """JAX/Pallas port of the PyTorch module. No learnable parameters."""

    def __init__(self, p=0.01, eps=1e-5):
        self.p = p
        self.eps = eps
        self.training = True

    def __call__(self, x, *, rng=None, force_permute=None, perm_key=None):
        # permute decision (Python-side glue, mirrors `random.random() < self.p`)
        if force_permute is None:
            permute = (rng or random).random() < self.p
        else:
            permute = force_permute

        if not (permute and self.training):
            return x

        N, C, H, W = x.shape
        if (H, W) == (1, 1):
            print('encountered bad dims')
            return x

        if perm_key is None:
            perm_key = jax.random.PRNGKey(0)
        perm_indices = jax.random.permutation(perm_key, N).astype(jnp.int32)
        return padain_pallas(x, perm_indices, self.eps)


def _reference_adain(content, style, eps=1e-5):
    # pure-JAX reference mirroring the PyTorch code (unbiased var).
    N, C, H, W = content.shape
    cf = content.reshape(N, C, -1)
    sf = style.reshape(N, C, -1)
    c_mean = cf.mean(axis=2).reshape(N, C, 1, 1)
    c_std = jnp.sqrt(cf.var(axis=2, ddof=1).reshape(N, C, 1, 1) + eps) + eps
    s_mean = sf.mean(axis=2).reshape(N, C, 1, 1)
    s_std = jnp.sqrt(sf.var(axis=2, ddof=1).reshape(N, C, 1, 1) + eps)
    return (content - c_mean) / c_std * s_std + s_mean


if __name__ == "__main__":
    key = jax.random.PRNGKey(0)
    kx, kp = jax.random.split(key)

    N, C, H, W = 2, 4, 16, 16
    x = jax.random.normal(kx, (N, C, H, W), dtype=jnp.float32)

    module = PermuteAdaptiveInstanceNorm2d(p=0.01, eps=1e-5)
    module.training = True

    perm_indices = jax.random.permutation(kp, N).astype(jnp.int32)
    ref = _reference_adain(x, x[perm_indices], eps=1e-5)

    # 1) main fused single-kernel path (force the permute branch)
    out = jax.block_until_ready(module(x, force_permute=True, perm_key=kp))
    assert out.shape == x.shape and out.dtype == x.dtype
    assert jnp.allclose(out, ref, atol=1e-4, rtol=1e-4), "main path mismatch"

    # 2) oversized-HW split path, exercised by forcing a tiny VMEM budget
    out_split = jax.block_until_ready(
        padain_pallas(x, perm_indices, eps=1e-5, vmem_budget_bytes=16 * 1024))
    assert jnp.allclose(out_split, ref, atol=1e-4, rtol=1e-4), "split path mismatch"

    # 3) identity path (no permute)
    out_id = jax.block_until_ready(module(x, force_permute=False))
    assert jnp.array_equal(out_id, x)

    print("KERNEL_OK")
</pallas_src>

<mosaic_0001>
module attributes {stable_mosaic.version = 11 : i64} {
  func.func @_adain_fused_kernel(%arg0: i32, %arg1: i32, %arg2: memref<2xi32, #tpu.memory_space<smem>>, %arg3: memref<1x4x256xf32, #tpu.memory_space<vmem>>, %arg4: memref<1x4x256xf32, #tpu.memory_space<vmem>>, %arg5: memref<1x4x256xf32, #tpu.memory_space<vmem>>) attributes {dimension_semantics = [#tpu.dimension_semantics<parallel>, #tpu.dimension_semantics<parallel>], iteration_bounds = array<i64: 2, 1>, scalar_prefetch = 1 : i64, scratch_operands = 0 : i64, tpu.core_type = #tpu.core_type<tc>, window_params = [{transform_indices = @transform_0, window_bounds = array<i64: 1, 4, 256>}, {transform_indices = @transform_1, window_bounds = array<i64: 1, 4, 256>}, {transform_indices = @transform_2, window_bounds = array<i64: 1, 4, 256>}]} {
    %c0 = arith.constant 0 : index
    %c0_0 = arith.constant 0 : index
    %c0_1 = arith.constant 0 : index
    %0 = vector.load %arg3[%c0, %c0_0, %c0_1] : memref<1x4x256xf32, #tpu.memory_space<vmem>>, vector<1x4x256xf32>
    %c0_2 = arith.constant 0 : index
    %c0_3 = arith.constant 0 : index
    %c0_4 = arith.constant 0 : index
    %1 = vector.load %arg4[%c0_2, %c0_3, %c0_4] : memref<1x4x256xf32, #tpu.memory_space<vmem>>, vector<1x4x256xf32>
    %cst = arith.constant dense<0.000000e+00> : vector<1x4xf32>
    %2 = vector.multi_reduction <add>, %0, %cst [2] : vector<1x4x256xf32> to vector<1x4xf32>
    %3 = vector.shape_cast %2 : vector<1x4xf32> to vector<1x4x1xf32>
    %4 = arith.mulf %0, %0 : vector<1x4x256xf32>
    %cst_5 = arith.constant dense<0.000000e+00> : vector<1x4xf32>
    %5 = vector.multi_reduction <add>, %4, %cst_5 [2] : vector<1x4x256xf32> to vector<1x4xf32>
    %6 = vector.shape_cast %5 : vector<1x4xf32> to vector<1x4x1xf32>
    %cst_6 = arith.constant 3.906250e-03 : f32
    %7 = vector.broadcast %cst_6 : f32 to vector<1x4x1xf32>
    %8 = arith.mulf %3, %7 : vector<1x4x1xf32>
    %9 = arith.mulf %3, %8 : vector<1x4x1xf32>
    %10 = arith.subf %6, %9 : vector<1x4x1xf32>
    %cst_7 = arith.constant 0.00392156886 : f32
    %11 = vector.broadcast %cst_7 : f32 to vector<1x4x1xf32>
    %12 = arith.mulf %10, %11 : vector<1x4x1xf32>
    %cst_8 = arith.constant 0.000000e+00 : f32
    %13 = vector.broadcast %cst_8 : f32 to vector<1x4x1xf32>
    %14 = arith.maximumf %12, %13 : vector<1x4x1xf32>
    %cst_9 = arith.constant 9.99999974E-6 : f32
    %15 = vector.broadcast %cst_9 : f32 to vector<1x4x1xf32>
    %16 = arith.addf %14, %15 : vector<1x4x1xf32>
    %17 = math.sqrt %16 : vector<1x4x1xf32>
    %cst_10 = arith.constant 9.99999974E-6 : f32
    %18 = vector.broadcast %cst_10 : f32 to vector<1x4x1xf32>
    %19 = arith.addf %17, %18 : vector<1x4x1xf32>
    %cst_11 = arith.constant dense<0.000000e+00> : vector<1x4xf32>
    %20 = vector.multi_reduction <add>, %1, %cst_11 [2] : vector<1x4x256xf32> to vector<1x4xf32>
    %21 = vector.shape_cast %20 : vector<1x4xf32> to vector<1x4x1xf32>
    %22 = arith.mulf %1, %1 : vector<1x4x256xf32>
    %cst_12 = arith.constant dense<0.000000e+00> : vector<1x4xf32>
    %23 = vector.multi_reduction <add>, %22, %cst_12 [2] : vector<1x4x256xf32> to vector<1x4xf32>
    %24 = vector.shape_cast %23 : vector<1x4xf32> to vector<1x4x1xf32>
    %cst_13 = arith.constant 3.906250e-03 : f32
    %25 = vector.broadcast %cst_13 : f32 to vector<1x4x1xf32>
    %26 = arith.mulf %21, %25 : vector<1x4x1xf32>
    %27 = arith.mulf %21, %26 : vector<1x4x1xf32>
    %28 = arith.subf %24, %27 : vector<1x4x1xf32>
    %cst_14 = arith.constant 0.00392156886 : f32
    %29 = vector.broadcast %cst_14 : f32 to vector<1x4x1xf32>
    %30 = arith.mulf %28, %29 : vector<1x4x1xf32>
    %cst_15 = arith.constant 0.000000e+00 : f32
    %31 = vector.broadcast %cst_15 : f32 to vector<1x4x1xf32>
    %32 = arith.maximumf %30, %31 : vector<1x4x1xf32>
    %cst_16 = arith.constant 9.99999974E-6 : f32
    %33 = vector.broadcast %cst_16 : f32 to vector<1x4x1xf32>
    %34 = arith.addf %32, %33 : vector<1x4x1xf32>
    %35 = math.sqrt %34 : vector<1x4x1xf32>
    %36 = arith.divf %35, %19 : vector<1x4x1xf32>
    %37 = arith.mulf %8, %36 : vector<1x4x1xf32>
    %38 = arith.subf %26, %37 : vector<1x4x1xf32>
    %39 = vector.broadcast %36 : vector<1x4x1xf32> to vector<1x4x256xf32>
    %40 = arith.mulf %0, %39 : vector<1x4x256xf32>
    %41 = vector.broadcast %38 : vector<1x4x1xf32> to vector<1x4x256xf32>
    %42 = arith.addf %40, %41 : vector<1x4x256xf32>
    %c0_17 = arith.constant 0 : index
    %c0_18 = arith.constant 0 : index
    %c0_19 = arith.constant 0 : index
    %43 = vector.load %arg5[%c0_17, %c0_18, %c0_19] : memref<1x4x256xf32, #tpu.memory_space<vmem>>, vector<1x4x256xf32>
    tpu.vector_store %arg5[%c0_17, %c0_18, %c0_19], %42 {strides = array<i32>} : memref<1x4x256xf32, #tpu.memory_space<vmem>>, vector<1x4x256xf32>,
    return
  }
  func.func @transform_0(%arg0: i32, %arg1: i32, %arg2: memref<2xi32, #tpu.memory_space<smem>>) -> (i32, i32, i32) {
    %c0_i32 = arith.constant 0 : i32
    %c0_i32_0 = arith.constant 0 : i32
    return %arg0, %arg1, %c0_i32 : i32, i32, i32
  }
  func.func @transform_1(%arg0: i32, %arg1: i32, %arg2: memref<2xi32, #tpu.memory_space<smem>>) -> (i32, i32, i32) {
    %0 = arith.index_cast %arg0 : i32 to index
    %1 = memref.load %arg2[%0] : memref<2xi32, #tpu.memory_space<smem>>
    %c0_i32 = arith.constant 0 : i32
    %c0_i32_0 = arith.constant 0 : i32
    return %1, %arg1, %c0_i32 : i32, i32, i32
  }
  func.func @transform_2(%arg0: i32, %arg1: i32, %arg2: memref<2xi32, #tpu.memory_space<smem>>) -> (i32, i32, i32) {
    %c0_i32 = arith.constant 0 : i32
    %c0_i32_0 = arith.constant 0 : i32
    return %arg0, %arg1, %c0_i32 : i32, i32, i32
  }
}

</mosaic_0001>

<bundles_post_ra>
// kernel: tpu_custom_call.1
= control target key start
LH: loop header
LB: loop body
LE: loop exit
PB: predicated region body
PF: predicated region fallthrough
CT: control target
= control target key end

     0   :  { %s1110_s0 = inlined_call_operand.hbm [shape: s32[2], index: 0, kind: input, shape index: {}]   ;;  %s1111_s1 = inlined_call_operand.hbm [shape: f32[2,4,256], index: 1, kind: input, shape index: {}]   ;;  %s1112_s2 = inlined_call_operand.hbm [shape: f32[2,4,256], index: 2, kind: input, shape index: {}]   ;;  %s1113_s3 = inlined_call_operand.hbm [shape: f32[2,4,256], index: 3, kind: output, shape index: {}]  }
   0x1   :  { %1120 = sst [smem:[#allocation17_spill]] %s1111_s1  ;;  %s572_s14 = scalar_lea.hbm %s1110_s0, 16 }
   0x2   :  { %p573_p0 = scmp.ne.s32.totalorder %s1110_s0, %s572_s14  ;;  %p576_p1 = scmp.lt.u32.totalorder %s572_s14, %s1110_s0 }
   0x4   :  { %p578_p2 = pnand %p576_p1, %p573_p0 }
   0x6   :  { %581 = shalt.err (!%p578_p2)  }
   0x7   :  { %s756_s19 = smov [#allocation3]  }
   0x8   :  { %9 = dma.hbm_to_smem %s1110_s0, 16, %s756_s19, [#allocation2] }
   0x9   :  { %706 = dma.done.wait [#allocation2], 16 }
   0xa   :  { %707 = vsyncadd [#allocation2], 4294967280 }
   0xb   :  { %11 = sfence }
   0xc   :  { %12 = vsyncpa [#allocation5], 0 }
   0xd   :  { %14 = vsyncpa [#allocation5 + $0x1], 0 }
   0xe   :  { %15 = vsyncpa [#allocation8], 0 }
   0xf   :  { %17 = vsyncpa [#allocation8 + $0x1], 0 }
  0x10   :  { %18 = vsyncpa [#allocation6], 0 }
  0x11   :  { %20 = vsyncpa [#allocation6 + $0x1], 0  ;;  %s793_s22 = smov 0   ;;  %s795_s23 = smov 0  }
  0x12   :  { %s797_s24 = smov 0   ;;  %s799_s25 = smov 0  }
  0x13   :  { %s801_s26 = smov 0   ;;  %s803_s0 = smov 0  }
  0x14   :  { %s805_s27 = smov 0   ;;  %s807_s28 = smov 0  }
  0x15   :  { %s809_s29 = smov 0  }
  0x16 LB: > { %s445_s30 = sadd.s32 4294967295, %s754_s29   ;;  %s446_s4 = sadd.s32 4294967294, %s754_s29   ;;  %s754_s29 = sphi %s809_s29, %s26_s29   ;;  %s750_s28 = sphi %s807_s28, %s1151_s28   ;;  %s746_s27 = sphi %s805_s27, %s1150_s27   ;;  %s742_s0 = sphi %s803_s0, %s1149_s0   ;;  %s738_s26 = sphi %s801_s26, %s1148_s26   ;;  %s734_s25 = sphi %s799_s25, %s1147_s25   ;;  %s730_s24 = sphi %s797_s24, %s1146_s24   ;;  %s726_s23 = sphi %s795_s23, %s1145_s23   ;;  %s722_s22 = sphi %s793_s22, %s1144_s22  }
  0x17   : > { %s38_s5 = sadd.s32 1, %s750_s28  ;;  %s47_s6 = sadd.s32 1, %s742_s0 }
  0x18   : > { %p40_p3 = scmp.ge.s32.totalorder %s38_s5, 2  ;;  %p54_p4 = scmp.ne.s32.totalorder %s742_s0, %s738_s26 }
  0x19   : > { %p1115_p5 = scmp.eq.s32.totalorder %s754_s29, 0  ;;  %p60_p6 = scmp.ne.s32.totalorder %s738_s26, %s734_s25 }
  0x1a   : > { %s1153_s5 = smov (%p40_p3, %s38_s5), 0  ;;  %p858_p8 = scmp.eq.s32.totalorder %s445_s30, 0 }
  0x1b   : > { %1121 = sst [smem:[#allocation16_spill]] %s1153_s5  ;;  %p854_p7 = por %p1115_p5, %p54_p4 }
  0x1c   : > { %s42_s9 = ssub.s32 %s750_s28, %s1153_s5  ;;  %s865_s10 = sld [smem:[#allocation3 + %s750_s28]] }
  0x1d   : > { %p45_p9 = scmp.eq.s32.totalorder %s42_s9, 0  ;;  %p872_p10 = por %p858_p8, %p60_p6 }
  0x1e   : > { %s877_s12 = sld [smem:[#allocation3 + %s1153_s5]]  ;;  %p116_p11 = scmp.eq.s32.totalorder %s445_s30, 1 }
  0x1f   : > { %s1124_s11 = scalar_select %p872_p10, 1, 0 }
  0x20   : > { %s880_s13 = scalar_select %p45_p9, %s742_s0, %s47_s6  }
  0x21   : > { %p885_p12 = por %p116_p11, %p54_p4  ;;  %p122_p13 = scmp.eq.s32.totalorder %s446_s4, 1 }
  0x22   : > { %p1114_p1 = scmp.lt.s32.totalorder %s754_s29, 2  ;;  %s142_s16 = sand.u32 1, %s742_s0  }
  0x23   : > { %s1125_s14 = scalar_select %p885_p12, 1, 0 }
  0x24   : > { %p894_p2 = por %p122_p13, %p60_p6  ;;  %s449_s17 = sshll.u32 %s142_s16, 3 }
  0x25   : > { %s464_s18 = sshll.u32 %s750_s28, 7  ;;  %s1127_s1 = sld [smem:[#allocation17_spill]] }
  0x26   : > { %s1126_s15 = scalar_select %p894_p2, 1, 0 }
  0x27   : > { %s146_s30 = scalar_lea.vmem [#allocation4], %s449_s17  ;;  %p911_p3 = pnand %p1114_p1, %p854_p7 }
  0x28   : > { %s156_s4 = sshll.u32 %s146_s30, 4  ;;  %s143_s9 = scalar_lea.sflag [#allocation5], %s142_s16  ;;  %s905_s4 = int_to_ptr.vmem [resolvable:$true] %s156_s4 }
  0x29   : > { %p584_p11 = pneg %p911_p3 }
  0x2b   : > { %s903_s21 = scalar_lea.hbm %s1127_s1, %s464_s18  ;;  %s587_s19 = scalar_lea.hbm %s1127_s1, 256 }
  0x2c   : > { %s582_s18 = scalar_lea.hbm %s903_s21, 128  ;;  %p588_p7 = scmp.lt.u32.totalorder %s903_s21, %s1127_s1 }
  0x2d   : > { %p583_p9 = scmp.ne.s32.totalorder %s903_s21, %s582_s18  ;;  %p589_p1 = scmp.lt.u32.totalorder %s587_s19, %s582_s18 }
  0x2e   : > { %p591_p4 = scmp.lt.u32.totalorder %s582_s18, %s903_s21 }
  0x2f   : > { %p585_p13 = pnand %p584_p11, %p583_p9  ;;  %p590_p5 = por %p589_p1, %p588_p7 }
  0x31   : > { %p586_p0 = pneg %p585_p13  ;;  %p592_p6 = por %p591_p4, %p590_p5 }
  0x33   : > { %p593_p2 = pnand %p592_p6, %p586_p0 }
  0x35   : > { %596 = shalt.err (!%p593_p2)
}
  0x36   : > { %s597_s16 = scalar_lea.vmem %s905_s4, 128  ;;  %s757_s17 = smov [#allocation4]  }
  0x37   : > { %p598_p9 = scmp.ne.s32.totalorder %s905_s4, %s597_s16  ;;  %s602_s7 = sshll.u32 %s757_s17, 4  ;;  %s603_s7 = int_to_ptr.vmem [resolvable:$false] %s602_s7 }
  0x38   : > { %s604_s20 = scalar_lea.vmem %s603_s7, 256  ;;  %p605_p10 = scmp.lt.s32.totalorder %s905_s4, %s603_s7 }
  0x39   : > { %p600_p13 = pnand %p598_p9, %p584_p11  ;;  %p606_p1 = scmp.lt.s32.totalorder %s604_s20, %s597_s16 }
  0x3b   : > { %p601_p12 = pneg %p600_p13  ;;  %p607_p7 = por %p606_p1, %p605_p10 }
  0x3d   : > { %p608_p5 = pnand %p607_p7, %p601_p12 }
  0x3f   : > { %611 = shalt.err (!%p608_p5)
}
  0x40   : > { %478 = dma.hbm_to_vmem [thread:$0]  (!%p911_p3), %s903_s21, 128, %s905_s4, %s143_s9  }
  0x41   : > { %p1129_p10 = scmp.lt.s32.totalorder %s754_s29, 3  ;;  %p1130_p12 = scmp.ge.s32.totalorder %s754_s29, 1 }
  0x42   : > { %s72_s18 = ssub.s32 %s865_s10, %s877_s12  ;;  %s77_s19 = sadd.s32 1, %s730_s24 }
  0x43   : > { %p946_p0 = pnand %p1130_p12, %p1129_p10  ;;  %p75_p2 = scmp.eq.s32.totalorder %s72_s18, 0 }
  0x44   : > { %p84_p4 = scmp.ne.s32.totalorder %s730_s24, %s726_s23  ;;  %p90_p6 = scmp.ne.s32.totalorder %s726_s23, %s722_s22 }
  0x45   : > { %s163_s30 = sand.u32 1, %s730_s24   ;;  %p1132_p11 = scmp.eq.s32.totalorder %s754_s29, 0 }
  0x46   : > { %s959_s16 = scalar_select %p75_p2, %s730_s24, %s77_s19  }
  0x47   : > { %p86_p9 = por %p84_p4, %p1132_p11  ;;  %p965_p13 = por %p90_p6, %p858_p8 }
  0x48   : > { %s452_s4 = sshll.u32 %s163_s30, 3  ;;  %p1134_p3 = scmp.lt.s32.totalorder %s754_s29, 2 }
  0x49   : > { %s1133_s21 = scalar_select %p965_p13, 1, 0 }
  0x4a   : > { %p971_p1 = pnand %p1134_p3, %p86_p9  ;;  %p1136_p7 = pmov %p1134_p3 }
  0x4b   : > { %s468_s10 = scalar_select %p86_p9, [#allocation3], [#allocation10] }
  0x4c   : > { %s469_s22 = scalar_select %p86_p9, %s750_s28, 0 }
  0x4d   : > { %s1155_s10 = smov (!%p1136_p7, %s468_s10), [#allocation11]  ;;  %p1137_p5 = pmov %p1134_p3 }
  0x4e   : > { %s167_s8 = scalar_lea.vmem [#allocation7], %s452_s4  ;;  %s164_s1 = scalar_lea.sflag [#allocation8], %s163_s30 }
  0x4f   : > { %s1157_s22 = smov (!%p1137_p5, %s469_s22), 0  ;;  %s178_s17 = sshll.u32 %s167_s8, 4  ;;  %s980_s17 = int_to_ptr.vmem [resolvable:$true] %s178_s17 }
  0x50   : > { %s168_s12 = sld [smem:[%s1155_s10 + %s1157_s22]]  ;;  %p614_p10 = pneg %p971_p1 }
  0x51   : > { %s617_s22 = scalar_lea.hbm %s1112_s2, 256 }
  0x56   : > { %s465_s7 = sshll.u32 %s168_s12, 7 }
  0x57   : > { %s985_s19 = scalar_lea.hbm %s1112_s2, %s465_s7 }
  0x58   : > { %s612_s5 = scalar_lea.hbm %s985_s19, 128  ;;  %p618_p4 = scmp.lt.u32.totalorder %s985_s19, %s1112_s2 }
  0x59   : > { %p613_p8 = scmp.ne.s32.totalorder %s985_s19, %s612_s5  ;;  %p619_p6 = scmp.lt.u32.totalorder %s617_s22, %s612_s5 }
  0x5a   : > { %p621_p9 = scmp.lt.u32.totalorder %s612_s5, %s985_s19 }
  0x5b   : > { %p615_p12 = pnand %p614_p10, %p613_p8  ;;  %p620_p11 = por %p619_p6, %p618_p4 }
  0x5d   : > { %p616_p2 = pneg %p615_p12  ;;  %p622_p3 = por %p621_p9, %p620_p11 }
  0x5f   : > { %p623_p7 = pnand %p622_p3, %p616_p2 }
  0x61   : > { %626 = shalt.err (!%p623_p7)
}
  0x62   : > { %s627_s30 = scalar_lea.vmem %s980_s17, 128  ;;  %s758_s7 = smov [#allocation7]  }
  0x63   : > { %p628_p5 = scmp.ne.s32.totalorder %s980_s17, %s627_s30  ;;  %s632_s20 = sshll.u32 %s758_s7, 4  ;;  %s633_s20 = int_to_ptr.vmem [resolvable:$false] %s632_s20 }
  0x64   : > { %s634_s18 = scalar_lea.vmem %s633_s20, 256  ;;  %p635_p13 = scmp.lt.s32.totalorder %s980_s17, %s633_s20 }
  0x65   : > { %p630_p8 = pnand %p628_p5, %p614_p10  ;;  %p636_p4 = scmp.lt.s32.totalorder %s634_s18, %s627_s30 }
  0x67   : > { %p631_p12 = pneg %p630_p8  ;;  %p637_p6 = por %p636_p4, %p635_p13 }
  0x69   : > { %p638_p11 = pnand %p637_p6, %p631_p12 }
  0x6b   : > { %641 = shalt.err (!%p638_p11)
}
  0x6c   : > { %483 = dma.hbm_to_vmem [thread:$0]  (!%p971_p1), %s985_s19, 128, %s980_s17, %s164_s1  }
  0x6d   : > { %187 = sbr.rel (%p946_p0) target bundleno = 333 (0x14d), region = 28  ;;  %s1015_s5 = sand.u32 (!%p946_p0), 1, %s738_s26  }
  0x6e   : > { %s456_s4 = sshll.u32 (!%p946_p0), %s1015_s5, 3  ;;  %s190_s10 = scalar_lea.sflag (!%p946_p0), [#allocation5], %s1015_s5 }
  0x6f   : > { %s193_s22 = scalar_lea.vmem (!%p946_p0), [#allocation4], %s456_s4  ;;  %p1138_p13 = scmp.ne.s32.totalorder (!%p946_p0), %s1124_s11, 0 }
  0x74   : > { %709 = dma.done.wait (%p1138_p13), %s190_s10, 128  }
  0x75   : > { %711 = vsyncadd (%p1138_p13), %s190_s10, 4294967168  ;;  %s198_s1 = sand.u32 1, %s726_s23   ;;  %p1139_p0 = scmp.ne.s32.totalorder %s1133_s21, 0 }
  0x76   : > { %s457_s6 = sshll.u32 %s198_s1, 3  ;;  %s199_s9 = scalar_lea.sflag [#allocation8], %s198_s1 }
  0x77   : > { %s202_s17 = scalar_lea.vmem [#allocation7], %s457_s6 }
  0x78   : > { %713 = dma.done.wait (%p1139_p0), %s199_s9, 128  }
  0x79   : > { %715 = vsyncadd (%p1139_p0), %s199_s9, 4294967168  ;;  %vm234_vm0 = vcmask 1043456   ;;  %v230_v0 = vld [vmem:[%s202_s17] sm:$0xff]  ;;  %v1030_v1 = vld [vmem:[%s193_s22] sm:$0xff]  ;;  %v759_v43 = vmov 839922192   ;;  %v301_v45 = vlaneseq }
  0x7a   : > { %v264_v2 = vcombine.high %v230_v0, %v230_v0  ;;  %v266_v3 = vsel %vm234_vm0, %v230_v0, 0.0  ;;  %v232_v4 = vcombine.high %v1030_v1, %v1030_v1  ;;  %v235_v5 = vsel %vm234_vm0, %v1030_v1, 0.0  ;;  %s466_s11 = sshll.u32 %s746_s27, 7  ;;  %s227_s21 = scalar_lea.vmem [#allocation9], %s456_s4 }
  0x7b   : > { %v271_v6 = vmul.f32 %v230_v0, %v230_v0  ;;  %v240_v7 = vmul.f32 %v1030_v1, %v1030_v1  ;;  %v299_v44 = vunpack.c.l.s4 %v759_v43  ;;  %v302_v48 = vshrl.u32 %v301_v45, 7  ;;  %s335_s19 = sshll.u32 %s227_s21, 4  ;;  %s1052_s30 = scalar_lea.hbm %s1113_s3, %s466_s11  ;;  %s1054_s19 = int_to_ptr.vmem [resolvable:$true] %s335_s19 }
  0x7c   : > { %v267_v8 = vsel %vm234_vm0, %v264_v2, 0.0  ;;  %v236_v9 = vsel %vm234_vm0, %v232_v4, 0.0  ;;  %s319_s7 = scalar_lea.sflag [#allocation6], %s1015_s5  ;;  %s642_s27 = scalar_lea.vmem %s1054_s19, 128 }
  0x7d   : > { %v268_v10 = vadd.f32 %v267_v8, %v266_v3  ;;  %v237_v11 = vadd.f32 %v236_v9, %v235_v5  ;;  %v273_v12 = vcombine.high %v271_v6, %v271_v6  ;;  %v275_v13 = vsel %vm234_vm0, %v271_v6, 0.0  ;;  %p643_p1 = scmp.ne.s32.totalorder %s1054_s19, %s642_s27  ;;  %p1140_p10 = scmp.ne.s32.totalorder %s1125_s14, 0 }
  0x7e   : > { %v242_v14 = vcombine.high %v240_v7, %v240_v7  ;;  %v244_v15 = vsel %vm234_vm0, %v240_v7, 0.0  ;;  %v300_v47 = vunpack.c.0.s8 %v299_v44  ;;  %s760_s20 = smov [#allocation9]  }
  0x7f   : > { %269 = vadd.xlane.f32.xlu1 %v268_v10  ;;  %238 = vadd.xlane.f32.xlu0 %v237_v11  ;;  %v276_v16 = vsel %vm234_vm0, %v273_v12, 0.0  ;;  %p644_p2 = pnand %p643_p1, %p1140_p10  ;;  %s646_s18 = sshll.u32 %s760_s20, 4  ;;  %s647_s18 = int_to_ptr.vmem [resolvable:$false] %s646_s18 }
  0x80   : > { %v277_v17 = vadd.f32 %v276_v16, %v275_v13  ;;  %v245_v18 = vsel %vm234_vm0, %v242_v14, 0.0  ;;  %v303_v51 = vsub.s32 %v300_v47, %v302_v48  ;;  %s648_s4 = scalar_lea.vmem %s647_s18, 256  ;;  %p649_p3 = scmp.lt.s32.totalorder %s1054_s19, %s647_s18 }
  0x81   : > { %v246_v19 = vadd.f32 %v245_v18, %v244_v15  ;;  %p645_p9 = pneg %p644_p2  ;;  %p650_p7 = scmp.lt.s32.totalorder %s648_s4, %s642_s27 }
  0x83   : > { %278 = vadd.xlane.f32.xlu1 %v277_v17  ;;  %247 = vadd.xlane.f32.xlu0 %v246_v19  ;;  %p651_p5 = por %p650_p7, %p649_p3 }
  0x85   : > { %p652_p8 = pnand %p651_p5, %p645_p9 }
 0x10c   : > { %v270_v20 = vpop.xlane.xlu1 %269  ;;  %v239_v21 = vpop.xlane.xlu0 %238 }
 0x10d   : > { %v280_v22 = vmul.f32 0.00390625, %v270_v20  ;;  %v249_v23 = vmul.f32 0.00390625, %v239_v21 }
 0x10f   : > { %v281_v24 = vmul.f32 %v280_v22, %v270_v20  ;;  %v250_v25 = vmul.f32 %v249_v23, %v239_v21 }
 0x110   : > { %v279_v26 = vpop.xlane.xlu1 %278  ;;  %v248_v27 = vpop.xlane.xlu0 %247 }
 0x111   : > { %v282_v28 = vsub.f32 %v279_v26, %v281_v24  ;;  %v251_v29 = vsub.f32 %v248_v27, %v250_v25 }
 0x113   : > { %v252_v30 = vmul.f32 0.003921569, %v251_v29  ;;  %v283_v31 = vmul.f32 0.003921569, %v282_v28 }
 0x115   : > { %v253_v32 = vmax.f32 %v252_v30, 0.0  ;;  %v284_v34 = vmax.f32 %v283_v31, 0.0 }
 0x117   : > { %v254_v33 = vadd.f32 1e-05, %v253_v32  ;;  %v285_v35 = vadd.f32 1e-05, %v284_v34 }
 0x119   : > { %566 = vrsqrt.f32 %v254_v33  ;;  %vm257_vm1 = vcmp.eq.f32.partialorder %v254_v33, inf  ;;  %v260_v38 = vand.u32 2147483648, %v254_v33  ;;  %vm259_vm2 = vcmp.eq.f32.partialorder %v254_v33, 0.0 }
 0x11a   : > { %568 = vrsqrt.f32 %v285_v35  ;;  %vm288_vm3 = vcmp.eq.f32.partialorder %v285_v35, inf  ;;  %v291_v49 = vand.u32 2147483648, %v285_v35  ;;  %vm290_vm4 = vcmp.eq.f32.partialorder %v285_v35, 0.0 }
 0x123   : > { %v567_v36 = vpop.eup %566 }
 0x124   : > { %v256_v37 = vmul.f32 %v567_v36, %v254_v33  ;;  %v569_v42 = vpop.eup %568 }
 0x125   : > { %v287_v46 = vmul.f32 %v569_v42, %v285_v35 }
 0x126   : > { %v258_v39 = vsel %vm257_vm1, %v254_v33, %v256_v37 }
 0x127   : > { %v261_v40 = vsel %vm259_vm2, %v260_v38, %v258_v39  ;;  %v289_v50 = vsel %vm288_vm3, %v285_v35, %v287_v46 }
 0x128   : > { %v262_v41 = vadd.f32 1e-05, %v261_v40  ;;  %v292_v53 = vsel %vm290_vm4, %v291_v49, %v289_v50 }
 0x12a   : > { %570 = vrcp.f32 %v262_v41 }
 0x134   : > { %v571_v52 = vpop.eup %570 }
 0x135   : > { %v294_v54 = vmul.f32 %v571_v52, %v292_v53 }
 0x137   : > { %v295_v55 = vmul.f32 %v294_v54, %v249_v23  ;;  %v304_v56 = vrot.slane %v294_v54, %v303_v51 }
 0x139   : > { %v296_v57 = vsub.f32 %v280_v22, %v295_v55  ;;  %v306_v58 = vmul.f32 %v304_v56, %v1030_v1 }
 0x13b   : > { %v314_v59 = vrot.slane %v296_v57, %v303_v51 }
 0x13d   : > { %v316_v60 = vadd.f32 %v314_v59, %v306_v58 }
 0x13f   : > { %317 = vst [vmem:[%s227_s21] sm:$0xff] %v316_v60 }
 0x140   : > { %655 = shalt.err (!%p652_p8)
}
 0x141   : > { %s656_s5 = scalar_lea.hbm %s1052_s30, 128  ;;  %s660_s1 = scalar_lea.hbm %s1113_s3, 256 }
 0x142   : > { %p657_p12 = scmp.ne.s32.totalorder %s1052_s30, %s656_s5  ;;  %p661_p11 = scmp.lt.u32.totalorder %s1052_s30, %s1113_s3 }
 0x143   : > { %p662_p13 = scmp.lt.u32.totalorder %s660_s1, %s656_s5  ;;  %p664_p1 = scmp.lt.u32.totalorder %s656_s5, %s1052_s30 }
 0x144   : > { %p658_p4 = pnand %p657_p12, %p1140_p10 }
 0x145   : > { %p663_p0 = por %p662_p13, %p661_p11 }
 0x146   : > { %p659_p6 = pneg %p658_p4 }
 0x147   : > { %p665_p2 = por %p664_p1, %p663_p0 }
 0x149   : > { %p666_p9 = pnand %p665_p2, %p659_p6 }
 0x14b   : > { %669 = shalt.err (!%p666_p9)
}
 0x14c   : > { %473 = dma.vmem_to_hbm [thread:$0]  (%p1140_p10), %s1054_s19, 128, %s1052_s30, %s319_s7  }
 0x14d PF: > { %s347_s17 = sand.u32 1, %s734_s25   ;;  %p1141_p3 = scmp.ne.s32.totalorder %s1126_s15, 0 }
 0x14e   : > { %p1142_p7 = scmp.ge.s32.totalorder %s754_s29, 2  ;;  %s348_s11 = scalar_lea.sflag [#allocation6], %s347_s17 }
 0x150   : > { %p485_p5 = pnand %p1142_p7, %p1141_p3 }
 0x152   : > { %717 = dma.done.wait (!%p485_p5), %s348_s11, 128  }
 0x153   : > { %719 = vsyncadd (!%p485_p5), %s348_s11, 4294967168  ;;  %s26_s29 = sadd.s32 1, %s754_s29   ;;  %s1143_s14 = sld [smem:[#allocation16_spill]] }
 0x154   : > { %p23_p8 = scmp.ge.s32.totalorder %s26_s29, 4   ;;  %s1144_s22 = smov %s726_s23 }
 0x155   : > { %s1145_s23 = smov %s730_s24  ;;  %s1146_s24 = smov %s959_s16 }
 0x156   : > { %s1147_s25 = smov %s738_s26  ;;  %s1148_s26 = smov %s742_s0 }
 0x157   : > { %s1149_s0 = smov %s880_s13  ;;  %s1150_s27 = smov %s750_s28 }
 0x158   :  { %25 = sbr.rel (!%p23_p8) target bundleno = 22 (0x16), region = 86 }
 0x159   : > { %s1151_s28 = smov %s1143_s14 }
 0x15f   :  { %353 = vsyncpa [#allocation5], 1 }
 0x160   :  { %355 = vsyncpa [#allocation5 + $0x1], 1 }
 0x161   :  { %356 = vsyncpa [#allocation8], 1 }
 0x162   :  { %358 = vsyncpa [#allocation8 + $0x1], 1 }
 0x163   :  { %359 = vsyncpa [#allocation6], 1 }
 0x164   :  { %361 = vsyncpa [#allocation6 + $0x1], 1 }

</bundles_post_ra>
